<compile_context>
chip_gen: v7x
topology: tpu7x:2x2x1
jax: 0.10.0
libtpu: 0.0.40
codegen_flags: <defaults>
</compile_context>

<pallas_src>
import functools

import jax
import jax.numpy as jnp
from jax.experimental import pallas as pl
from jax.experimental.pallas import tpu as pltpu

LANE = 128
SUBLANE = 8


def _round_up(x, m):
    return ((x + m - 1) // m) * m


# ---------------------------------------------------------------------------
# Kernel: fused 3-layer MLP + row softmax on one (TM, *) batch tile.
# Weights arrive pre-transposed as (in_features, out_features), zero-padded to
# 128-lane multiples, in bf16. Biases are (1, out_features) f32. x tile is bf16.
# ---------------------------------------------------------------------------
def mlp_softmax_kernel(x_ref, w1_ref, b1_ref, w2_ref, b2_ref, w3_ref, b3_ref,
                       o_ref, *, out_size):
    x = x_ref[...]  # (TM, Kp) bf16 — cast once in the wrapper, not per tile.

    # fc1 + ReLU  (bf16 operands -> MXU, f32 accumulate)
    h1 = jnp.dot(x, w1_ref[...], preferred_element_type=jnp.float32)
    h1 = jnp.maximum(h1 + b1_ref[...], 0.0)

    # fc2 + ReLU
    h2 = jnp.dot(h1.astype(jnp.bfloat16), w2_ref[...],
                 preferred_element_type=jnp.float32)
    h2 = jnp.maximum(h2 + b2_ref[...], 0.0)

    # fc3
    logits = jnp.dot(h2.astype(jnp.bfloat16), w3_ref[...],
                     preferred_element_type=jnp.float32)
    logits = logits + b3_ref[...]

    # Lane-padding columns must not dilute the softmax: mask them to -inf.
    col = jax.lax.broadcasted_iota(jnp.int32, logits.shape, 1)
    logits = jnp.where(col < out_size, logits, -jnp.inf)

    # Numerically stable softmax over dim=1. Exact divide: the EUP approx
    # reciprocal (~1e-4 rel. error) breaks row-sum==1 checks and softmax is
    # not the bottleneck of this kernel.
    m = jnp.max(logits, axis=1, keepdims=True)
    e = jnp.exp(logits - m)
    denom = jnp.sum(e, axis=1, keepdims=True)
    o_ref[...] = (e / denom).astype(o_ref.dtype)


# ---------------------------------------------------------------------------
# One-time weight preprocessing (hoisted out of the forward, cache the result).
# ---------------------------------------------------------------------------
def prepare_params(params):
    """Transpose to (in, out), pad to 128-lane multiples, cast matmul operands
    to bf16. Call once and reuse across forwards."""
    w1, b1, w2, b2, w3, b3 = params  # PyTorch layout: W = (out, in), b = (out,)
    in_size, hidden, out_size = w1.shape[1], w1.shape[0], w3.shape[0]
    kp = _round_up(in_size, LANE)
    hp = _round_up(hidden, LANE)
    np_ = _round_up(out_size, LANE)

    def pad2(a, rows, cols):
        return jnp.pad(a, ((0, rows - a.shape[0]), (0, cols - a.shape[1])))

    return dict(
        w1t=pad2(w1.T, kp, hp).astype(jnp.bfloat16),
        w2t=pad2(w2.T, hp, hp).astype(jnp.bfloat16),
        w3t=pad2(w3.T, hp, np_).astype(jnp.bfloat16),
        b1p=pad2(b1.reshape(1, -1).astype(jnp.float32), 1, hp),
        b2p=pad2(b2.reshape(1, -1).astype(jnp.float32), 1, hp),
        b3p=pad2(b3.reshape(1, -1).astype(jnp.float32), 1, np_),
        in_size=in_size, hidden=hidden, out_size=out_size,
        kp=kp, hp=hp, np_=np_,
    )


def _resident_spec(shape):
    """Grid-invariant (constant index_map) input: single-buffer it. Halves the
    weights' VMEM footprint (biggest win on v7x's 64 MiB VMEM)."""
    try:
        return pl.BlockSpec(shape, lambda i: (0, 0), pipeline_mode=pl.Buffered(1))
    except TypeError:  # older jax without pipeline_mode on BlockSpec
        return pl.BlockSpec(shape, lambda i: (0, 0))


# ---------------------------------------------------------------------------
# Forward wrapper: pad / tile the batch, call the kernel, slice padding off.
# ---------------------------------------------------------------------------
def neural_network_forward(x, prepared):
    batch, in_size = x.shape
    kp, hp, np_ = prepared["kp"], prepared["hp"], prepared["np_"]
    out_size = prepared["out_size"]
    assert in_size == prepared["in_size"]

    # Batch tile selection:
    #   * tiny batches: one sublane-aligned tile
    #   * moderate batches: >=2 tiles so the "parallel" axis can shard across
    #     v7x's two TensorCores
    #   * large batches: 512-row tiles (near HBM roofline for streaming tiles)
    if batch <= SUBLANE:
        tm = SUBLANE
    elif batch <= 1024:
        tm = _round_up(pl.cdiv(batch, 2), SUBLANE)
    else:
        tm = 512
    bp = _round_up(batch, tm)

    # Pad and cast the streaming input once, in the wrapper (bf16 halves its
    # HBM->VMEM DMA bytes and VMEM footprint; the MXU needed bf16 anyway).
    xp = jnp.pad(x, ((0, bp - batch), (0, kp - in_size))).astype(jnp.bfloat16)

    # Explicit scoped-VMEM budget (v5e default is only 16 MiB).
    bf16_b, f32_b = 2, 4
    weight_bytes = (kp * hp + hp * hp + hp * np_) * bf16_b \
        + SUBLANE * (2 * hp + np_) * f32_b            # biases (sublane-padded)
    stream_bytes = 2 * tm * kp * bf16_b + 2 * tm * np_ * f32_b  # x/out dbl-buf
    scratch_bytes = 3 * tm * hp * f32_b               # h1 / h2 / logits vregs
    total_bytes = weight_bytes + stream_bytes + scratch_bytes
    vmem_limit = int(min(max(2 * total_bytes, 16 << 20), 64 << 20))

    # Advisory cost for XLA's scheduler around the custom call.
    cost = pl.CostEstimate(
        flops=2 * bp * (kp * hp + hp * hp + hp * np_),
        transcendentals=bp * np_,
        bytes_accessed=bp * kp * bf16_b + weight_bytes + bp * np_ * f32_b,
    )

    kernel = functools.partial(mlp_softmax_kernel, out_size=out_size)

    out_padded = pl.pallas_call(
        kernel,
        out_shape=jax.ShapeDtypeStruct((bp, np_), jnp.float32),
        grid_spec=pltpu.PrefetchScalarGridSpec(
            num_scalar_prefetch=0,
            grid=(bp // tm,),
            in_specs=[
                pl.BlockSpec((tm, kp), lambda i: (i, 0)),  # x tile (streams)
                _resident_spec((kp, hp)),                  # w1^T (resident)
                _resident_spec((1, hp)),                   # b1
                _resident_spec((hp, hp)),                  # w2^T
                _resident_spec((1, hp)),                   # b2
                _resident_spec((hp, np_)),                 # w3^T
                _resident_spec((1, np_)),                  # b3
            ],
            out_specs=pl.BlockSpec((tm, np_), lambda i: (i, 0)),
        ),
        compiler_params=pltpu.CompilerParams(
            dimension_semantics=("parallel",),
            vmem_limit_bytes=vmem_limit),
        cost_estimate=cost,
    )(xp, prepared["w1t"], prepared["b1p"], prepared["w2t"], prepared["b2p"],
      prepared["w3t"], prepared["b3p"])

    # Slice away batch / lane padding.
    return out_padded[:batch, :out_size]


# ---------------------------------------------------------------------------
# Parameter init (PyTorch nn.Linear layout) and pure-JAX reference.
# ---------------------------------------------------------------------------
def init_params(key, input_size, hidden_size, output_size):
    ks = jax.random.split(key, 6)

    def linear(kw, kb, fan_in, fan_out):
        bound = 1.0 / jnp.sqrt(fan_in)
        w = jax.random.uniform(kw, (fan_out, fan_in), jnp.float32, -bound, bound)
        b = jax.random.uniform(kb, (fan_out,), jnp.float32, -bound, bound)
        return w, b

    w1, b1 = linear(ks[0], ks[1], input_size, hidden_size)
    w2, b2 = linear(ks[2], ks[3], hidden_size, hidden_size)
    w3, b3 = linear(ks[4], ks[5], hidden_size, output_size)
    return (w1, b1, w2, b2, w3, b3)


def _reference_forward(x, params):
    """Pure-JAX f32 reference of the effective PyTorch forward."""
    w1, b1, w2, b2, w3, b3 = params
    h1 = jnp.maximum(x @ w1.T + b1, 0.0)
    h2 = jnp.maximum(h1 @ w2.T + b2, 0.0)
    logits = h2 @ w3.T + b3
    return jax.nn.softmax(logits, axis=1)


if __name__ == "__main__":
    input_size, hidden_size, output_size = 32, 32, 16
    batch = 8

    key = jax.random.PRNGKey(0)
    k_x, k_p = jax.random.split(key)

    x = jax.random.normal(k_x, (batch, input_size), dtype=jnp.float32)
    params = init_params(k_p, input_size, hidden_size, output_size)

    prepared = prepare_params(params)          # one-time weight preprocessing
    out = neural_network_forward(x, prepared)
    out = jax.block_until_ready(out)

    # Sanity: shape, rows sum to 1 (exact-divide softmax), matches the f32
    # reference within bf16-matmul tolerance.
    ref = _reference_forward(x, params)
    row_sums = jnp.sum(out, axis=1)
    assert out.shape == (batch, output_size)
    assert bool(jnp.all(jnp.isfinite(out)))
    assert bool(jnp.allclose(row_sums, 1.0, atol=1e-4))
    assert bool(jnp.allclose(out, ref, atol=5e-2))

    print("KERNEL_OK")
</pallas_src>

<mosaic_0001>
module attributes {stable_mosaic.version = 11 : i64} {
  func.func @mlp_softmax_kernel(%arg0: i32, %arg1: memref<8x128xbf16, #tpu.memory_space<vmem>>, %arg2: memref<128x128xbf16, #tpu.memory_space<vmem>>, %arg3: memref<1x128xf32, #tpu.memory_space<vmem>>, %arg4: memref<128x128xbf16, #tpu.memory_space<vmem>>, %arg5: memref<1x128xf32, #tpu.memory_space<vmem>>, %arg6: memref<128x128xbf16, #tpu.memory_space<vmem>>, %arg7: memref<1x128xf32, #tpu.memory_space<vmem>>, %arg8: memref<8x128xf32, #tpu.memory_space<vmem>>) attributes {dimension_semantics = [#tpu.dimension_semantics<parallel>], iteration_bounds = array<i64: 1>, scalar_prefetch = 0 : i64, scratch_operands = 0 : i64, tpu.core_type = #tpu.core_type<tc>, window_params = [{transform_indices = @transform_0, window_bounds = array<i64: 8, 128>}, {pipeline_mode = #tpu.pipeline_mode<synchronous>, transform_indices = @transform_1, window_bounds = array<i64: 128, 128>}, {pipeline_mode = #tpu.pipeline_mode<synchronous>, transform_indices = @transform_2, window_bounds = array<i64: 1, 128>}, {pipeline_mode = #tpu.pipeline_mode<synchronous>, transform_indices = @transform_3, window_bounds = array<i64: 128, 128>}, {pipeline_mode = #tpu.pipeline_mode<synchronous>, transform_indices = @transform_4, window_bounds = array<i64: 1, 128>}, {pipeline_mode = #tpu.pipeline_mode<synchronous>, transform_indices = @transform_5, window_bounds = array<i64: 128, 128>}, {pipeline_mode = #tpu.pipeline_mode<synchronous>, transform_indices = @transform_6, window_bounds = array<i64: 1, 128>}, {transform_indices = @transform_7, window_bounds = array<i64: 8, 128>}]} {
    %c0 = arith.constant 0 : index
    %c0_0 = arith.constant 0 : index
    %0 = vector.load %arg1[%c0, %c0_0] : memref<8x128xbf16, #tpu.memory_space<vmem>>, vector<8x128xbf16>
    %c0_1 = arith.constant 0 : index
    %c0_2 = arith.constant 0 : index
    %1 = vector.load %arg2[%c0_1, %c0_2] : memref<128x128xbf16, #tpu.memory_space<vmem>>, vector<128x128xbf16>
    %cst = arith.constant dense<0.000000e+00> : vector<8x128xf32>
    %2 = tpu.matmul %0, %1, %cst {dimension_numbers = #tpu.dot_dimension_numbers<[1], [0], [0], [1], [0, 0, 1, 1], [], []>} : vector<8x128xbf16>, vector<128x128xbf16>, vector<8x128xf32> -> vector<8x128xf32>
    %c0_3 = arith.constant 0 : index
    %c0_4 = arith.constant 0 : index
    %3 = vector.load %arg3[%c0_3, %c0_4] : memref<1x128xf32, #tpu.memory_space<vmem>>, vector<1x128xf32>
    %4 = vector.broadcast %3 : vector<1x128xf32> to vector<8x128xf32>
    %5 = arith.addf %2, %4 : vector<8x128xf32>
    %cst_5 = arith.constant 0.000000e+00 : f32
    %6 = vector.broadcast %cst_5 : f32 to vector<8x128xf32>
    %7 = arith.maximumf %5, %6 : vector<8x128xf32>
    %8 = arith.truncf %7 : vector<8x128xf32> to vector<8x128xbf16>
    %c0_6 = arith.constant 0 : index
    %c0_7 = arith.constant 0 : index
    %9 = vector.load %arg4[%c0_6, %c0_7] : memref<128x128xbf16, #tpu.memory_space<vmem>>, vector<128x128xbf16>
    %cst_8 = arith.constant dense<0.000000e+00> : vector<8x128xf32>
    %10 = tpu.matmul %8, %9, %cst_8 {dimension_numbers = #tpu.dot_dimension_numbers<[1], [0], [0], [1], [0, 0, 1, 1], [], []>} : vector<8x128xbf16>, vector<128x128xbf16>, vector<8x128xf32> -> vector<8x128xf32>
    %c0_9 = arith.constant 0 : index
    %c0_10 = arith.constant 0 : index
    %11 = vector.load %arg5[%c0_9, %c0_10] : memref<1x128xf32, #tpu.memory_space<vmem>>, vector<1x128xf32>
    %12 = vector.broadcast %11 : vector<1x128xf32> to vector<8x128xf32>
    %13 = arith.addf %10, %12 : vector<8x128xf32>
    %cst_11 = arith.constant 0.000000e+00 : f32
    %14 = vector.broadcast %cst_11 : f32 to vector<8x128xf32>
    %15 = arith.maximumf %13, %14 : vector<8x128xf32>
    %16 = arith.truncf %15 : vector<8x128xf32> to vector<8x128xbf16>
    %c0_12 = arith.constant 0 : index
    %c0_13 = arith.constant 0 : index
    %17 = vector.load %arg6[%c0_12, %c0_13] : memref<128x128xbf16, #tpu.memory_space<vmem>>, vector<128x128xbf16>
    %cst_14 = arith.constant dense<0.000000e+00> : vector<8x128xf32>
    %18 = tpu.matmul %16, %17, %cst_14 {dimension_numbers = #tpu.dot_dimension_numbers<[1], [0], [0], [1], [0, 0, 1, 1], [], []>} : vector<8x128xbf16>, vector<128x128xbf16>, vector<8x128xf32> -> vector<8x128xf32>
    %c0_15 = arith.constant 0 : index
    %c0_16 = arith.constant 0 : index
    %19 = vector.load %arg7[%c0_15, %c0_16] : memref<1x128xf32, #tpu.memory_space<vmem>>, vector<1x128xf32>
    %20 = vector.broadcast %19 : vector<1x128xf32> to vector<8x128xf32>
    %21 = arith.addf %18, %20 : vector<8x128xf32>
    %22 = tpu.iota {dimensions = array<i32: 1>} : vector<8x128xi32>
    %c16_i32 = arith.constant 16 : i32
    %23 = vector.broadcast %c16_i32 : i32 to vector<8x128xi32>
    %24 = arith.cmpi slt, %22, %23 : vector<8x128xi32>
    %cst_17 = arith.constant 0xFF800000 : f32
    %25 = vector.broadcast %cst_17 : f32 to vector<8x128xf32>
    %26 = arith.select %24, %21, %25 : vector<8x128xi1>, vector<8x128xf32>
    %cst_18 = arith.constant dense<0xFF800000> : vector<8xf32>
    %27 = vector.multi_reduction <maximumf>, %26, %cst_18 [1] : vector<8x128xf32> to vector<8xf32>
    %28 = vector.shape_cast %27 : vector<8xf32> to vector<8x1xf32>
    %29 = vector.broadcast %28 : vector<8x1xf32> to vector<8x128xf32>
    %30 = arith.subf %26, %29 : vector<8x128xf32>
    %31 = math.exp %30 : vector<8x128xf32>
    %cst_19 = arith.constant dense<0.000000e+00> : vector<8xf32>
    %32 = vector.multi_reduction <add>, %31, %cst_19 [1] : vector<8x128xf32> to vector<8xf32>
    %33 = vector.shape_cast %32 : vector<8xf32> to vector<8x1xf32>
    %34 = vector.broadcast %33 : vector<8x1xf32> to vector<8x128xf32>
    %35 = arith.divf %31, %34 : vector<8x128xf32>
    %c0_20 = arith.constant 0 : index
    %c0_21 = arith.constant 0 : index
    %36 = vector.load %arg8[%c0_20, %c0_21] : memref<8x128xf32, #tpu.memory_space<vmem>>, vector<8x128xf32>
    tpu.vector_store %arg8[%c0_20, %c0_21], %35 {strides = array<i32>} : memref<8x128xf32, #tpu.memory_space<vmem>>, vector<8x128xf32>,
    return
  }
  func.func @transform_0(%arg0: i32) -> (i32, i32) {
    %c0_i32 = arith.constant 0 : i32
    %c0_i32_0 = arith.constant 0 : i32
    return %arg0, %c0_i32 : i32, i32
  }
  func.func @transform_1(%arg0: i32) -> (i32, i32) {
    %c0_i32 = arith.constant 0 : i32
    %c0_i32_0 = arith.constant 0 : i32
    %c0_i32_1 = arith.constant 0 : i32
    return %c0_i32, %c0_i32_0 : i32, i32
  }
  func.func @transform_2(%arg0: i32) -> (i32, i32) {
    %c0_i32 = arith.constant 0 : i32
    %c0_i32_0 = arith.constant 0 : i32
    %c0_i32_1 = arith.constant 0 : i32
    return %c0_i32, %c0_i32_0 : i32, i32
  }
  func.func @transform_3(%arg0: i32) -> (i32, i32) {
    %c0_i32 = arith.constant 0 : i32
    %c0_i32_0 = arith.constant 0 : i32
    %c0_i32_1 = arith.constant 0 : i32
    return %c0_i32, %c0_i32_0 : i32, i32
  }
  func.func @transform_4(%arg0: i32) -> (i32, i32) {
    %c0_i32 = arith.constant 0 : i32
    %c0_i32_0 = arith.constant 0 : i32
    %c0_i32_1 = arith.constant 0 : i32
    return %c0_i32, %c0_i32_0 : i32, i32
  }
  func.func @transform_5(%arg0: i32) -> (i32, i32) {
    %c0_i32 = arith.constant 0 : i32
    %c0_i32_0 = arith.constant 0 : i32
    %c0_i32_1 = arith.constant 0 : i32
    return %c0_i32, %c0_i32_0 : i32, i32
  }
  func.func @transform_6(%arg0: i32) -> (i32, i32) {
    %c0_i32 = arith.constant 0 : i32
    %c0_i32_0 = arith.constant 0 : i32
    %c0_i32_1 = arith.constant 0 : i32
    return %c0_i32, %c0_i32_0 : i32, i32
  }
  func.func @transform_7(%arg0: i32) -> (i32, i32) {
    %c0_i32 = arith.constant 0 : i32
    %c0_i32_0 = arith.constant 0 : i32
    return %arg0, %c0_i32 : i32, i32
  }
}

</mosaic_0001>

<bundles_post_ra>
// kernel: tpu_custom_call.1
= control target key start
LH: loop header
LB: loop body
LE: loop exit
PB: predicated region body
PF: predicated region fallthrough
CT: control target
= control target key end

     0   :  { %12 = vsyncpa [#allocation3], 0  ;;  %s876_s0 = inlined_call_operand.hbm [shape: bf16[8,128], index: 0, kind: input, shape index: {}]   ;;  %s877_s1 = inlined_call_operand.hbm [shape: bf16[128,128], index: 1, kind: input, shape index: {}]   ;;  %s878_s2 = inlined_call_operand.vmem [shape: f32[1,128], index: 2, kind: input, shape index: {}]   ;;  %s879_s3 = inlined_call_operand.hbm [shape: bf16[128,128], index: 3, kind: input, shape index: {}]   ;;  %s880_s4 = inlined_call_operand.vmem [shape: f32[1,128], index: 4, kind: input, shape index: {}]   ;;  %s881_s5 = inlined_call_operand.hbm [shape: bf16[128,128], index: 5, kind: input, shape index: {}]   ;;  %s882_s6 = inlined_call_operand.vmem [shape: f32[1,128], index: 6, kind: input, shape index: {}]   ;;  %s883_s7 = inlined_call_operand.hbm [shape: f32[8,128], index: 7, kind: output, shape index: {}]  }
   0x1   :  { %13 = vsyncpa [#allocation6], 0 }
   0x2   :  { %14 = vsyncpa [#allocation9], 0 }
   0x3   :  { %15 = vsyncpa [#allocation4], 0  ;;  %s719_s24 = smov [#allocation5]   ;;  %s601_s28 = scalar_lea.hbm %s877_s1, 1024 }
   0x4   :  { %s31_s25 = sshll.u32 %s719_s24, 4  ;;  %p602_p0 = scmp.ne.s32.totalorder %s877_s1, %s601_s28  ;;  %s32_s25 = int_to_ptr.vmem [resolvable:$true] %s31_s25 }
   0x5   :  { %p605_p1 = scmp.lt.u32.totalorder %s601_s28, %s877_s1 }
   0x7   :  { %p607_p2 = pnand %p605_p1, %p602_p0 }
   0x9   :  { %610 = shalt.err (!%p607_p2)
}
   0xa   :  { %s611_s10 = scalar_lea.vmem %s32_s25, 1024  ;;  %p616_p4 = scmp.lt.s32.totalorder %s32_s25, %s32_s25 }
   0xb   :  { %p612_p3 = scmp.ne.s32.totalorder %s32_s25, %s611_s10  ;;  %p617_p5 = scmp.lt.s32.totalorder %s611_s10, %s611_s10 }
   0xd   :  { %p618_p6 = por %p617_p5, %p616_p4 }
   0xf   :  { %p619_p7 = pnand %p618_p6, %p612_p3 }
  0x11   :  { %622 = shalt.err (!%p619_p7)
}
  0x12   :  { %s720_s11 = smov 64   ;;  %s721_s12 = smov 4  }
  0x13   :  { %37 = dma.hbm_to_vmem [thread:$0]  %s877_s1, 1024, %s32_s25, [#allocation6], %s720_s11, %s720_s11, %s721_s12  }
  0x14   :  { %s722_s15 = smov [#allocation2]   ;;  %s723_s17 = smov [#allocation7]  }
  0x15   :  { %s22_s16 = sshll.u32 %s722_s15, 4  ;;  %s45_s18 = sshll.u32 %s723_s17, 4  ;;  %s23_s16 = int_to_ptr.vmem [resolvable:$true] %s22_s16  ;;  %s46_s18 = int_to_ptr.vmem [resolvable:$true] %s45_s18 }
  0x16   :  { %s623_s21 = scalar_lea.hbm %s876_s0, 64 }
  0x17   :  { %p624_p8 = scmp.ne.s32.totalorder %s876_s0, %s623_s21  ;;  %p627_p9 = scmp.lt.u32.totalorder %s623_s21, %s876_s0 }
  0x19   :  { %p629_p10 = pnand %p627_p9, %p624_p8 }
  0x1b   :  { %632 = shalt.err (!%p629_p10)
}
  0x1c   :  { %s633_s1 = scalar_lea.vmem %s23_s16, 64  ;;  %p638_p12 = scmp.lt.s32.totalorder %s23_s16, %s23_s16 }
  0x1d   :  { %p634_p11 = scmp.ne.s32.totalorder %s23_s16, %s633_s1  ;;  %p639_p13 = scmp.lt.s32.totalorder %s633_s1, %s633_s1 }
  0x1f   :  { %p640_p0 = por %p639_p13, %p638_p12 }
  0x21   :  { %p641_p1 = pnand %p640_p0, %p634_p11 }
  0x23   :  { %644 = shalt.err (!%p641_p1)
}
  0x24   :  { %25 = dma.hbm_to_vmem [thread:$0]  %s876_s0, 64, %s23_s16, [#allocation3]  }
  0x25   :  { %s645_s30 = scalar_lea.hbm %s879_s3, 1024 }
  0x26   :  { %p646_p2 = scmp.ne.s32.totalorder %s879_s3, %s645_s30  ;;  %p649_p3 = scmp.lt.u32.totalorder %s645_s30, %s879_s3 }
  0x28   :  { %p651_p4 = pnand %p649_p3, %p646_p2 }
  0x2a   :  { %654 = shalt.err (!%p651_p4)
}
  0x2b   :  { %s655_s14 = scalar_lea.vmem %s46_s18, 1024  ;;  %p660_p6 = scmp.lt.s32.totalorder %s46_s18, %s46_s18 }
  0x2c   :  { %p656_p5 = scmp.ne.s32.totalorder %s46_s18, %s655_s14  ;;  %p661_p7 = scmp.lt.s32.totalorder %s655_s14, %s655_s14 }
  0x2e   :  { %p662_p8 = por %p661_p7, %p660_p6 }
  0x30   :  { %p663_p9 = pnand %p662_p8, %p656_p5 }
  0x32   :  { %666 = shalt.err (!%p663_p9)
}
  0x33   :  { %51 = dma.hbm_to_vmem [thread:$0]  %s879_s3, 1024, %s46_s18, [#allocation6], %s720_s11, %s720_s11, %s721_s12  }
  0x34   :  { %s724_s16 = smov [#allocation8]   ;;  %s667_s21 = scalar_lea.hbm %s881_s5, 1024 }
  0x35   :  { %s59_s17 = sshll.u32 %s724_s16, 4  ;;  %p668_p10 = scmp.ne.s32.totalorder %s881_s5, %s667_s21  ;;  %s60_s17 = int_to_ptr.vmem [resolvable:$true] %s59_s17 }
  0x36   :  { %p671_p11 = scmp.lt.u32.totalorder %s667_s21, %s881_s5 }
  0x38   :  { %p673_p12 = pnand %p671_p11, %p668_p10 }
  0x3a   :  { %676 = shalt.err (!%p673_p12)
}
  0x3b   :  { %s677_s1 = scalar_lea.vmem %s60_s17, 1024  ;;  %p682_p0 = scmp.lt.s32.totalorder %s60_s17, %s60_s17 }
  0x3c   :  { %p678_p13 = scmp.ne.s32.totalorder %s60_s17, %s677_s1  ;;  %p683_p1 = scmp.lt.s32.totalorder %s677_s1, %s677_s1 }
  0x3e   :  { %p684_p2 = por %p683_p1, %p682_p0 }
  0x40   :  { %p685_p3 = pnand %p684_p2, %p678_p13 }
  0x42   :  { %688 = shalt.err (!%p685_p3)
}
  0x43   :  { %65 = dma.hbm_to_vmem [thread:$0]  %s881_s5, 1024, %s60_s17, [#allocation9], %s720_s11, %s720_s11, %s721_s12  }
  0x44   :  { %711 = dma.done.wait [#allocation3], 64  }
  0x45   :  { %712 = vsyncadd [#allocation3], 4294967232 }
  0x46   :  { %713 = dma.done.wait [#allocation6], 2048  }
  0x47   :  { %714 = vsyncadd [#allocation6], 4294965248 }
  0x48   :  { %715 = dma.done.wait [#allocation9], 1024  }
  0x49   :  { %716 = vsyncadd [#allocation9], 4294966272  ;;  %v725_v0 = vmov 0.0   ;;  %vm726_vm0 = vmmov 0   ;;  %v573_v1 = vld [vmem:[#allocation5] sm:$0xff]   ;;  %v574_v2 = vld [vmem:[#allocation5 + $0x8] sm:$0xff]   ;;  %v419_v42 = vlaneseq }
  0x4a   :  { %504 = vmatprep.subr.bf16.mxu0 %v725_v0  ;;  %520 = vmatprep.mubr.msk.bf16.mxu0 %vm726_vm0, %v725_v0  ;;  %v575_v3 = vld [vmem:[#allocation5 + $0x10] sm:$0xff]   ;;  %v581_v4 = vld [vmem:[#allocation7] sm:$0xff]   ;;  %v576_v5 = vld [vmem:[#allocation5 + $0x18] sm:$0xff]  }
  0x4b   :  { %524 = vmatprep.subr.bf16.mxu1 %v725_v0  ;;  %540 = vmatprep.mubr.msk.bf16.mxu1 %vm726_vm0, %v725_v0  ;;  %v582_v6 = vld [vmem:[#allocation7 + $0x8] sm:$0xff]   ;;  %v577_v7 = vld [vmem:[#allocation5 + $0x20] sm:$0xff]   ;;  %v583_v8 = vld [vmem:[#allocation7 + $0x10] sm:$0xff]   ;;  %v420_v43 = vand.u32 127, %v419_v42 }
  0x4c   :  { %505 = vmatpush3.bf16.msra.mxu0 %v573_v1  ;;  %525 = vmatpush3.bf16.msra.mxu1 %v581_v4  ;;  %v578_v9 = vld [vmem:[#allocation5 + $0x28] sm:$0xff]   ;;  %v584_v10 = vld [vmem:[#allocation7 + $0x18] sm:$0xff]   ;;  %v579_v11 = vld [vmem:[#allocation5 + $0x30] sm:$0xff]  }
  0x4d   :  { %506 = vmatprep.subr.bf16.mxu0 %v725_v0  ;;  %526 = vmatprep.subr.bf16.mxu1 %v725_v0  ;;  %v585_v12 = vld [vmem:[#allocation7 + $0x20] sm:$0xff]   ;;  %v580_v13 = vld [vmem:[#allocation5 + $0x38] sm:$0xff]   ;;  %v586_v14 = vld [vmem:[#allocation7 + $0x28] sm:$0xff]   ;;  %vm421_vm1 = vcmp.lt.s32.totalorder %v420_v43, 16 }
  0x4e   :  { %v81_v15 = vld [vmem:[#allocation2] sm:$0xf]  ;;  %v587_v16 = vld [vmem:[#allocation7 + $0x30] sm:$0xff]   ;;  %v589_v18 = vld [vmem:[#allocation8] sm:$0xff]  }
  0x4f   :  { %v588_v17 = vld [vmem:[#allocation7 + $0x38] sm:$0xff]   ;;  %v590_v19 = vld [vmem:[#allocation8 + $0x8] sm:$0xff]   ;;  %v591_v20 = vld [vmem:[#allocation8 + $0x10] sm:$0xff]  }
  0x50   :  { %507 = vmatpush3.bf16.msra.mxu0 %v574_v2  ;;  %527 = vmatpush3.bf16.msra.mxu1 %v582_v6  ;;  %v592_v21 = vld [vmem:[#allocation8 + $0x18] sm:$0xff]   ;;  %v593_v22 = vld [vmem:[#allocation8 + $0x20] sm:$0xff]   ;;  %v594_v23 = vld [vmem:[#allocation8 + $0x28] sm:$0xff]  }
  0x51   :  { %508 = vmatprep.subr.bf16.mxu0 %v725_v0  ;;  %528 = vmatprep.subr.bf16.mxu1 %v725_v0  ;;  %v450_v24 = vld [vmem:[%s878_s2] ss:$0 sm:$0xff]  ;;  %v595_v32 = vld [vmem:[#allocation8 + $0x30] sm:$0xff]  }
  0x52   :  { %v596_v33 = vld [vmem:[#allocation8 + $0x38] sm:$0xff]  }
  0x53   :  { %v459_v34 = vld [vmem:[%s880_s4] ss:$0 sm:$0xff]  ;;  %s727_s4 = smov [#allocation10]  }
  0x54   :  { %509 = vmatpush3.bf16.msra.mxu0 %v575_v3  ;;  %529 = vmatpush3.bf16.msra.mxu1 %v583_v8  ;;  %v468_v44 = vld [vmem:[%s882_s6] ss:$0 sm:$0xff]  ;;  %s439_s28 = sshll.u32 %s727_s4, 4  ;;  %s440_s28 = int_to_ptr.vmem [resolvable:$true] %s439_s28 }
  0x55   :  { %510 = vmatprep.subr.bf16.mxu0 %v725_v0  ;;  %530 = vmatprep.subr.bf16.mxu1 %v725_v0  ;;  %s689_s6 = scalar_lea.vmem %s440_s28, 128  ;;  %p694_p5 = scmp.lt.s32.totalorder %s440_s28, %s440_s28 }
  0x56   :  { %p690_p4 = scmp.ne.s32.totalorder %s440_s28, %s689_s6  ;;  %p695_p6 = scmp.lt.s32.totalorder %s689_s6, %s689_s6 }
  0x58   :  { %511 = vmatpush3.bf16.msra.mxu0 %v576_v5  ;;  %531 = vmatpush3.bf16.msra.mxu1 %v584_v10  ;;  %p696_p7 = por %p695_p6, %p694_p5 }
  0x59   :  { %512 = vmatprep.subr.bf16.mxu0 %v725_v0  ;;  %532 = vmatprep.subr.bf16.mxu1 %v725_v0 }
  0x5a   :  { %p697_p8 = pnand %p696_p7, %p690_p4 }
  0x5c   :  { %513 = vmatpush3.bf16.msra.mxu0 %v577_v7  ;;  %533 = vmatpush3.bf16.msra.mxu1 %v585_v12 }
  0x5d   :  { %514 = vmatprep.subr.bf16.mxu0 %v725_v0  ;;  %534 = vmatprep.subr.bf16.mxu1 %v725_v0 }
  0x60   :  { %515 = vmatpush3.bf16.msra.mxu0 %v578_v9  ;;  %535 = vmatpush3.bf16.msra.mxu1 %v586_v14 }
  0x61   :  { %516 = vmatprep.subr.bf16.mxu0 %v725_v0  ;;  %536 = vmatprep.subr.bf16.mxu1 %v725_v0 }
  0x64   :  { %517 = vmatpush3.bf16.msra.mxu0 %v579_v11  ;;  %537 = vmatpush3.bf16.msra.mxu1 %v587_v16 }
  0x65   :  { %518 = vmatprep.subr.bf16.mxu0 %v725_v0  ;;  %538 = vmatprep.subr.bf16.mxu1 %v725_v0 }
  0x68   :  { %519 = vmatpush3.bf16.msra.mxu0 %v580_v13  ;;  %539 = vmatpush3.bf16.msra.mxu1 %v588_v17 }
  0x69   :  { %544 = vmatprep.subr.bf16.mxu0 %v725_v0 }
  0x6b   :  { %521 = vmatmul.mubr.bf16.vlgmr.msra.gmra.mrb[0].mxu0 %v81_v15 }
  0x6c   :  { %560 = vmatprep.mubr.msk.bf16.mxu0 %vm726_vm0, %v725_v0  ;;  %545 = vmatpush3.bf16.msra.mxu0 %v589_v18 }
  0x6d   :  { %546 = vmatprep.subr.bf16.mxu0 %v725_v0 }
  0x70   :  { %547 = vmatpush3.bf16.msra.mxu0 %v590_v19 }
  0x71   :  { %548 = vmatprep.subr.bf16.mxu0 %v725_v0 }
  0x74   :  { %549 = vmatpush3.bf16.msra.mxu0 %v591_v20 }
  0x75   :  { %550 = vmatprep.subr.bf16.mxu0 %v725_v0 }
  0x78   :  { %551 = vmatpush3.bf16.msra.mxu0 %v592_v21 }
  0x79   :  { %552 = vmatprep.subr.bf16.mxu0 %v725_v0 }
  0x7c   :  { %553 = vmatpush3.bf16.msra.mxu0 %v593_v22 }
  0x7d   :  { %554 = vmatprep.subr.bf16.mxu0 %v725_v0 }
  0x80   :  { %555 = vmatpush3.bf16.msra.mxu0 %v594_v23 }
  0x81   :  { %556 = vmatprep.subr.bf16.mxu0 %v725_v0 }
  0x84   :  { %557 = vmatpush3.bf16.msra.mxu0 %v595_v32 }
  0x85   :  { %558 = vmatprep.subr.bf16.mxu0 %v725_v0 }
  0x88   :  { %559 = vmatpush3.bf16.msra.mxu0 %v596_v33 }
 0x13e   :  { %v187_v25 = vpop.f32.mrb[0].mxu0 }
 0x13f   :  { %v188_v26 = vadd.f32 %v450_v24, %v187_v25  ;;  %v522_v27 = vpop.f32.mrb[1].mxu0 }
 0x140   :  { %v190_v28 = vpop.f32.mrb[2].mxu0 }
 0x141   :  { %v193_v29 = vmax.f32 %v188_v26, 0.0  ;;  %v523_v30 = vpop.f32.mrb[3].mxu0 }
 0x143   :  { %v194_v31 = vpack.c.bf16 %v193_v29, %v193_v29 }
 0x145   :  { %541 = vmatmul.mubr.bf16.vlgmr.msra.gmra.mrb[0].mxu1 %v194_v31 }
 0x218   :  { %v300_v35 = vpop.f32.mrb[0].mxu1 }
 0x219   :  { %v301_v36 = vadd.f32 %v459_v34, %v300_v35  ;;  %v542_v37 = vpop.f32.mrb[1].mxu1 }
 0x21a   :  { %v303_v38 = vpop.f32.mrb[2].mxu1 }
 0x21b   :  { %v306_v39 = vmax.f32 %v301_v36, 0.0  ;;  %v543_v40 = vpop.f32.mrb[3].mxu1 }
 0x21d   :  { %v307_v41 = vpack.c.bf16 %v306_v39, %v306_v39 }
 0x21f   :  { %561 = vmatmul.mubr.bf16.vlgmr.msra.gmra.mrb[4].mxu0 %v307_v41 }
 0x2f2   :  { %v413_v45 = vpop.f32.mrb[4].mxu0 }
 0x2f3   :  { %v414_v46 = vadd.f32 %v468_v44, %v413_v45  ;;  %v562_v47 = vpop.f32.mrb[5].mxu0 }
 0x2f4   :  { %v416_v48 = vpop.f32.mrb[6].mxu0 }
 0x2f5   :  { %v563_v49 = vpop.f32.mrb[7].mxu0  ;;  %v422_v50 = vsel %vm421_vm1, %v414_v46, -inf }
 0x2f6   :  { %423 = vmax.xlane.f32.xlu0 %v422_v50 }
 0x383   :  { %v424_v51 = vpop.xlane.xlu0 %423 }
 0x384   :  { %v425_v52 = vsub.f32 %v422_v50, %v424_v51 }
 0x386   :  { %v426_v53 = vmul.f32 1.442695, %v425_v52 }
 0x388   :  { %597 = vpow2.f32 %v426_v53 }
 0x392   :  { %v598_v54 = vpop.eup %597 }
 0x393   :  { %428 = vadd.xlane.f32.xlu0 %v598_v54 }
 0x420   :  { %v429_v55 = vpop.xlane.xlu0 %428 }
 0x421   :  { %599 = vrcp.f32 %v429_v55 }
 0x42b   :  { %v600_v56 = vpop.eup %599 }
 0x42c   :  { %v431_v57 = vmul.f32 %v600_v56, %v598_v54 }
 0x42e   :  { %432 = vst [vmem:[#allocation10] sm:$0xff] %v431_v57 }
 0x42f   :  { %700 = shalt.err (!%p697_p8)
}
 0x430   :  { %s701_s8 = scalar_lea.hbm %s883_s7, 128 }
 0x431   :  { %p702_p9 = scmp.ne.s32.totalorder %s883_s7, %s701_s8  ;;  %p705_p10 = scmp.lt.u32.totalorder %s701_s8, %s883_s7 }
 0x433   :  { %p707_p11 = pnand %p705_p10, %p702_p9 }
 0x435   :  { %710 = shalt.err (!%p707_p11)
}
 0x436   :  { %442 = dma.vmem_to_hbm [thread:$0]  %s440_s28, 128, %s883_s7, [#allocation4]  }
 0x437   :  { %717 = dma.done.wait [#allocation4], 128  }
 0x438   :  { %718 = vsyncadd [#allocation4], 4294967168 }
 0x439   :  { %446 = vsyncpa [#allocation3], 1 }
 0x43a   :  { %447 = vsyncpa [#allocation6], 1 }
 0x43b   :  { %448 = vsyncpa [#allocation9], 1 }
 0x43c   :  { %449 = vsyncpa [#allocation4], 1 }

</bundles_post_ra>
